<compile_context>
chip_gen: v7x
topology: tpu7x:2x2x1
jax: 0.10.0
libtpu: 0.0.40
codegen_flags: <defaults>
</compile_context>

<pallas_src>
import functools
import math

import jax
import jax.numpy as jnp
from jax import lax
from jax.experimental import pallas as pl
from jax.experimental.pallas import tpu as pltpu


def _pair(v):
    if isinstance(v, (tuple, list)):
        assert len(v) == 2
        return int(v[0]), int(v[1])
    return int(v), int(v)


def _cdiv(a, b):
    return -(-a // b)


def _round_up(a, m):
    return _cdiv(a, m) * m


def _vmem_budgets():
    """Generation-aware VMEM budgets (v5e/v6e: 128 MiB physical, v7x: 64 MiB)."""
    cap = 64 * 1024 * 1024
    try:
        info = pltpu.get_tpu_info()
        cap = int(getattr(info, "vmem_capacity_bytes", cap) or cap)
    except Exception:
        pass
    block_budget = min(int(cap * 0.40), 80 * 1024 * 1024)   # for our block sizing math
    vmem_limit = min(int(cap * 0.75), 96 * 1024 * 1024)     # Mosaic scoped-VMEM limit
    return block_budget, vmem_limit


def _xla_conv(x, weight, bias, strides, pads, dils, groups):
    out = lax.conv_general_dilated(
        x.astype(jnp.float32), weight.astype(jnp.float32),
        window_strides=strides,
        padding=((pads[0], pads[0]), (pads[1], pads[1])),
        rhs_dilation=dils,
        feature_group_count=groups,
        dimension_numbers=("NCHW", "OIHW", "NCHW"))
    if bias is not None:
        out = out + bias.astype(jnp.float32)[None, :, None, None]
    return out.astype(x.dtype)


# ------------------------------------------------------------------------- kernels
def _gemm_bias_kernel(x_ref, w_ref, b_ref, o_ref):
    """Folded-K path: one MXU matmul per (row tile, cout tile) + f32 bias epilogue.

    x_ref: (1, tm, K)   w_ref: (K, tn)   b_ref: (1, tn) f32   o_ref: (1, tm, tn)
    """
    acc = jnp.dot(x_ref[0], w_ref[...], preferred_element_type=jnp.float32)
    o_ref[0, :, :] = (acc + b_ref[...]).astype(o_ref.dtype)


def _tap_gemm_kernel(x_ref, w_ref, b_ref, o_ref, *, tap_offsets, stride, rows, sub,
                     row_axis, aligned):
    """Per-tap implicit GEMM: whole padded image resident in VMEM; the KH*KW taps are
    accumulated in vregs over `sub`-row sub-tiles and each sub-tile is stored once.

    x_ref: (1, Lp, Cin)   w_ref: (T, Cin, tn)   b_ref: (1, tn) f32   o_ref: (1, rows, tn)
    """
    base = pl.program_id(row_axis) * (rows * stride)
    if aligned:
        base = pl.multiple_of(base, 8)
    for j in range(rows // sub):                       # static, fully unrolled
        sub_base = base + j * (sub * stride)
        acc = None
        for t, off in enumerate(tap_offsets):          # static, fully unrolled
            start = sub_base + off
            if stride == 1:
                lhs = x_ref[0, pl.ds(start, sub), :]
            else:
                lhs = x_ref[0, pl.ds(start, sub, stride=stride), :]
            d = jnp.dot(lhs, w_ref[t], preferred_element_type=jnp.float32)
            acc = d if acc is None else acc + d
        o_ref[0, j * sub:(j + 1) * sub, :] = (acc + b_ref[...]).astype(o_ref.dtype)


# ------------------------------------------------------------------------- wrapper
def conv2d_zbeta_forward(x, weight, bias=None, *, stride=1, padding=0, dilation=1,
                         groups=1, compute_dtype=jnp.bfloat16, fold_k_max=512):
    """Forward of Conv2DZBetaWrapperClass == nn.Conv2d(x) (zB rule is backward-only).

    x: (N, Cin, H, W)   weight: (Cout, Cin, KH, KW)   bias: (Cout,) or None.
    Returns (N, Cout, OH, OW) in x.dtype.  compute_dtype=jnp.float32 is the precision
    escape hatch for deep/wide layers; bf16 (default) keeps the MXU fed.
    """
    sh, sw = _pair(stride)
    ph, pw = _pair(padding)
    dh, dw = _pair(dilation)
    N, Cin, H, W = x.shape
    Cout, Cin_g, KH, KW = weight.shape

    if groups != 1 or Cin_g != Cin:
        # TODO(synk): grouped convolutions have no Pallas path here; defer to XLA.
        return _xla_conv(x, weight, bias, (sh, sw), (ph, pw), (dh, dw), groups)

    Hp, Wp = H + 2 * ph, W + 2 * pw
    OH = (Hp - (KH - 1) * dh - 1) // sh + 1
    OW = (Wp - (KW - 1) * dw - 1) // sw + 1

    isz = jnp.dtype(compute_dtype).itemsize
    block_budget, vmem_limit = _vmem_budgets()

    Cout_pad = _round_up(max(Cout, 128), 128)
    tn = 256 if Cout_pad % 256 == 0 else 128
    n_cout = Cout_pad // tn

    bias_f32 = jnp.zeros((Cout,), jnp.float32) if bias is None else bias.astype(jnp.float32)
    bias_pad = jnp.pad(bias_f32, (0, Cout_pad - Cout)).reshape(1, Cout_pad)

    x_nhwc = jnp.pad(x.astype(compute_dtype),
                     ((0, 0), (0, 0), (ph, ph), (pw, pw))).transpose(0, 2, 3, 1)

    # ---------------- Path A: folded-K (small Cin*KH*KW, incl. all 1x1 convs) --------
    if Cin * KH * KW <= fold_k_max:
        K = Cin * KH * KW
        M = OH * OW
        # Patches at *output* resolution (stride/dilation handled host-side).  The
        # KH*KW duplication is cheap because Cin is small, and buys a single MXU dot
        # per tile with K = Cin*KH*KW instead of KH*KW dots with K = Cin.
        cols = []
        for kh in range(KH):
            for kw in range(KW):
                h0, w0 = kh * dh, kw * dw
                cols.append(x_nhwc[:, h0:h0 + (OH - 1) * sh + 1:sh,
                                      w0:w0 + (OW - 1) * sw + 1:sw, :])
        x_col = jnp.concatenate(cols, axis=-1).reshape(N, M, K)

        w_mat = weight.transpose(2, 3, 1, 0).reshape(K, Cout)
        w_mat = jnp.pad(w_mat, ((0, 0), (0, Cout_pad - Cout))).astype(compute_dtype)

        # Row tile from the VMEM budget (double-buffered x/out blocks + weight tile);
        # keep >=2 parallel grid steps so both v7x TensorCores get work.
        denom = 2 * K * isz + 2 * tn * isz + tn * 4
        avail = max(block_budget - 2 * K * tn * isz - 8 * tn * 4, 8 * denom)
        tm = min(_round_up(M, 8), max(8, (avail // denom) // 8 * 8), 8192)
        if N * n_cout * _cdiv(M, tm) < 2 and M >= 16:
            tm = _round_up(_cdiv(M, 2), 8)
        n_m = _cdiv(M, tm)
        x_col = jnp.pad(x_col, ((0, 0), (0, n_m * tm - M), (0, 0)))

        grid = (N, n_m, n_cout)   # cout innermost: the (larger) x row tile is reused
        out = pl.pallas_call(
            _gemm_bias_kernel,
            out_shape=jax.ShapeDtypeStruct((N, n_m * tm, Cout_pad), compute_dtype),
            grid_spec=pltpu.PrefetchScalarGridSpec(
                num_scalar_prefetch=0,
                grid=grid,
                in_specs=[
                    pl.BlockSpec((1, tm, K), lambda b, i, j: (b, i, 0)),
                    pl.BlockSpec((K, tn), lambda b, i, j: (0, j)),
                    pl.BlockSpec((1, tn), lambda b, i, j: (0, j)),
                ],
                out_specs=pl.BlockSpec((1, tm, tn), lambda b, i, j: (b, i, j)),
            ),
            compiler_params=pltpu.CompilerParams(
                dimension_semantics=("parallel", "parallel", "parallel"),
                vmem_limit_bytes=vmem_limit,
            ),
        )(x_col, w_mat, bias_pad)

        out = out[:, :M, :Cout].reshape(N, OH, OW, Cout)
        return out.astype(x.dtype).transpose(0, 3, 1, 2)

    # ---------------- Path B: per-tap implicit GEMM (wide Cin) -----------------------
    if sh != sw:
        # TODO(synk): non-square stride on the wide-channel path; defer to XLA.
        return _xla_conv(x, weight, bias, (sh, sw), (ph, pw), (dh, dw), groups)

    T = KH * KW
    m8 = 8 // math.gcd(Wp, 8)       # th granularity that keeps row tiles 8-aligned

    # Resident footprint: whole padded image (once per batch item) + weight tile,
    # conservatively counting Pallas' double buffers; per-output-row cost sizes th.
    img_bytes = 2 * (Hp * Wp + (KH * dh + 2) * Wp) * Cin * isz
    w_bytes = 2 * T * Cin * tn * isz
    per_oh = Wp * (2 * tn * isz + tn * 4)
    avail = block_budget - img_bytes - w_bytes - 8 * tn * 4
    if avail < per_oh:
        # TODO(synk): image + weight tile exceed the VMEM budget; no HBM-tiled Pallas
        # path implemented for this case -- defer to the XLA convolution.
        return _xla_conv(x, weight, bias, (sh, sw), (ph, pw), (dh, dw), groups)

    th = max(1, min(OH, avail // per_oh, max(1, 8192 // Wp)))
    if th < OH:
        th = max(m8, (th // m8) * m8)
        if th >= OH:
            th = OH
    n_tiles = _cdiv(OH, th)
    if N * n_cout * n_tiles < 2 and OH >= 2 * m8:   # feed both v7x TensorCores
        th = max(m8, (_cdiv(OH, 2) // m8) * m8)
        n_tiles = _cdiv(OH, th)
    rows = th * Wp

    off_max = (KH - 1) * dh * Wp + (KW - 1) * dw
    Lp = max(Hp * Wp, (n_tiles - 1) * th * sh * Wp + off_max + (rows - 1) * sh + 1)
    x_flat = jnp.pad(x_nhwc.reshape(N, Hp * Wp, Cin), ((0, 0), (0, Lp - Hp * Wp), (0, 0)))

    w_k = weight.transpose(2, 3, 1, 0).reshape(T, Cin, Cout)
    w_k = jnp.pad(w_k, ((0, 0), (0, 0), (0, Cout_pad - Cout))).astype(compute_dtype)

    tap_offsets = tuple(kh * dh * Wp + kw * dw for kh in range(KH) for kw in range(KW))

    # Sub-tile the tap accumulation so partial sums stay in vregs (no VMEM accumulator
    # read-modify-write) and each output sub-tile is stored exactly once.
    sub = rows
    if rows > 512 and rows % 8 == 0:
        for cand in range((min(512, rows) // 8) * 8, 7, -8):
            if rows % cand == 0:
                sub = cand
                break

    kernel = functools.partial(
        _tap_gemm_kernel, tap_offsets=tap_offsets, stride=sh, rows=rows, sub=sub,
        row_axis=2, aligned=((rows * sh) % 8 == 0))

    grid = (N, n_cout, n_tiles)   # row tiles innermost: weight tile fetched once per (b, j)
    out = pl.pallas_call(
        kernel,
        out_shape=jax.ShapeDtypeStruct((N, n_tiles * rows, Cout_pad), compute_dtype),
        grid_spec=pltpu.PrefetchScalarGridSpec(
            num_scalar_prefetch=0,
            grid=grid,
            in_specs=[
                # Whole padded image; block index is constant over the inner grid axes,
                # so it is DMA'd to VMEM once per batch item (no halo-duplicated copy).
                pl.BlockSpec((1, Lp, Cin), lambda b, j, i: (b, 0, 0)),
                pl.BlockSpec((T, Cin, tn), lambda b, j, i: (0, 0, j)),
                pl.BlockSpec((1, tn), lambda b, j, i: (0, j)),
            ],
            out_specs=pl.BlockSpec((1, rows, tn), lambda b, j, i: (b, i, j)),
        ),
        compiler_params=pltpu.CompilerParams(
            dimension_semantics=("parallel", "parallel", "parallel"),
            vmem_limit_bytes=vmem_limit,
        ),
    )(x_flat, w_k, bias_pad)

    out = out.reshape(N, n_tiles * th, Wp, Cout_pad)[:, :OH, :OW, :Cout]
    return out.astype(x.dtype).transpose(0, 3, 1, 2)


if __name__ == "__main__":
    keys = jax.random.split(jax.random.PRNGKey(0), 6)

    def check(x, w, b, *, stride, padding, compute_dtype, atol=2e-2, rtol=2e-2):
        fwd = jax.jit(functools.partial(conv2d_zbeta_forward, stride=stride,
                                        padding=padding, compute_dtype=compute_dtype))
        y = jax.block_until_ready(fwd(x, w, b))
        ref = lax.conv_general_dilated(
            x, w, window_strides=(stride, stride),
            padding=((padding, padding), (padding, padding)),
            dimension_numbers=("NCHW", "OIHW", "NCHW"),
        ) + b[None, :, None, None]
        assert y.shape == ref.shape, (y.shape, ref.shape)
        err = float(jnp.max(jnp.abs(y - ref)))
        assert jnp.allclose(y, ref, atol=atol, rtol=rtol), err

    # 1) First-layer-style RGB 3x3 stride-1 conv (folded-K path, bf16 compute).
    x1 = jax.random.normal(keys[0], (2, 3, 16, 16), jnp.float32)
    w1 = 0.1 * jax.random.normal(keys[1], (8, 3, 3, 3), jnp.float32)
    b1 = 0.1 * jax.random.normal(keys[2], (8,), jnp.float32)
    check(x1, w1, b1, stride=1, padding=1, compute_dtype=jnp.bfloat16)

    # 2) Same conv with stride 2 (striding handled host-side in the folded path).
    check(x1, w1, b1, stride=2, padding=1, compute_dtype=jnp.bfloat16)

    # 3) Wider-channel 3x3 conv (per-tap implicit-GEMM path, f32 escape hatch).
    x3 = jax.random.normal(keys[3], (2, 64, 8, 8), jnp.float32)
    w3 = 0.05 * jax.random.normal(keys[4], (16, 64, 3, 3), jnp.float32)
    b3 = 0.05 * jax.random.normal(keys[5], (16,), jnp.float32)
    check(x3, w3, b3, stride=1, padding=1, compute_dtype=jnp.float32)

    print("KERNEL_OK")
</pallas_src>

<mosaic_0001>
module attributes {stable_mosaic.version = 11 : i64} {
  func.func @_gemm_bias_kernel(%arg0: i32, %arg1: i32, %arg2: i32, %arg3: memref<1x256x27xbf16, #tpu.memory_space<vmem>>, %arg4: memref<27x128xbf16, #tpu.memory_space<vmem>>, %arg5: memref<1x128xf32, #tpu.memory_space<vmem>>, %arg6: memref<1x256x128xbf16, #tpu.memory_space<vmem>>) attributes {dimension_semantics = [#tpu.dimension_semantics<parallel>, #tpu.dimension_semantics<parallel>, #tpu.dimension_semantics<parallel>], iteration_bounds = array<i64: 2, 1, 1>, scalar_prefetch = 0 : i64, scratch_operands = 0 : i64, tpu.core_type = #tpu.core_type<tc>, window_params = [{transform_indices = @transform_0, window_bounds = array<i64: 1, 256, 27>}, {transform_indices = @transform_1, window_bounds = array<i64: 27, 128>}, {transform_indices = @transform_2, window_bounds = array<i64: 1, 128>}, {transform_indices = @transform_3, window_bounds = array<i64: 1, 256, 128>}]} {
    %c0 = arith.constant 0 : index
    %c0_0 = arith.constant 0 : index
    %c0_1 = arith.constant 0 : index
    %0 = vector.load %arg3[%c0, %c0_0, %c0_1] : memref<1x256x27xbf16, #tpu.memory_space<vmem>>, vector<1x256x27xbf16>
    %1 = vector.shape_cast %0 : vector<1x256x27xbf16> to vector<256x27xbf16>
    %c0_2 = arith.constant 0 : index
    %c0_3 = arith.constant 0 : index
    %2 = vector.load %arg4[%c0_2, %c0_3] : memref<27x128xbf16, #tpu.memory_space<vmem>>, vector<27x128xbf16>
    %cst = arith.constant dense<0.000000e+00> : vector<256x128xf32>
    %3 = tpu.matmul %1, %2, %cst {dimension_numbers = #tpu.dot_dimension_numbers<[1], [0], [0], [1], [0, 0, 1, 1], [], []>} : vector<256x27xbf16>, vector<27x128xbf16>, vector<256x128xf32> -> vector<256x128xf32>
    %c0_4 = arith.constant 0 : index
    %c0_5 = arith.constant 0 : index
    %4 = vector.load %arg5[%c0_4, %c0_5] : memref<1x128xf32, #tpu.memory_space<vmem>>, vector<1x128xf32>
    %5 = vector.broadcast %4 : vector<1x128xf32> to vector<256x128xf32>
    %6 = arith.addf %3, %5 : vector<256x128xf32>
    %7 = arith.truncf %6 : vector<256x128xf32> to vector<256x128xbf16>
    %c0_6 = arith.constant 0 : index
    %c0_7 = arith.constant 0 : index
    %c0_8 = arith.constant 0 : index
    %8 = vector.load %arg6[%c0_6, %c0_7, %c0_8] : memref<1x256x128xbf16, #tpu.memory_space<vmem>>, vector<1x256x128xbf16>
    %9 = vector.shape_cast %8 : vector<1x256x128xbf16> to vector<256x128xbf16>
    %10 = vector.shape_cast %7 : vector<256x128xbf16> to vector<1x256x128xbf16>
    tpu.vector_store %arg6[%c0_6, %c0_7, %c0_8], %10 {strides = array<i32>} : memref<1x256x128xbf16, #tpu.memory_space<vmem>>, vector<1x256x128xbf16>,
    return
  }
  func.func @transform_0(%arg0: i32, %arg1: i32, %arg2: i32) -> (i32, i32, i32) {
    %c0_i32 = arith.constant 0 : i32
    %c0_i32_0 = arith.constant 0 : i32
    return %arg0, %arg1, %c0_i32 : i32, i32, i32
  }
  func.func @transform_1(%arg0: i32, %arg1: i32, %arg2: i32) -> (i32, i32) {
    %c0_i32 = arith.constant 0 : i32
    %c0_i32_0 = arith.constant 0 : i32
    return %c0_i32, %arg2 : i32, i32
  }
  func.func @transform_2(%arg0: i32, %arg1: i32, %arg2: i32) -> (i32, i32) {
    %c0_i32 = arith.constant 0 : i32
    %c0_i32_0 = arith.constant 0 : i32
    return %c0_i32, %arg2 : i32, i32
  }
  func.func @transform_3(%arg0: i32, %arg1: i32, %arg2: i32) -> (i32, i32, i32) {
    %c0_i32 = arith.constant 0 : i32
    return %arg0, %arg1, %arg2 : i32, i32, i32
  }
}

</mosaic_0001>

<bundles_post_ra>
// kernel: conv2d_zbeta_forward.1
= control target key start
LH: loop header
LB: loop body
LE: loop exit
PB: predicated region body
PF: predicated region fallthrough
CT: control target
= control target key end

     0   :  { %s1250_s12 = smov 0   ;;  %s1252_s13 = smov 0   ;;  %s1385_s0 = inlined_call_operand.vmem [shape: bf16[2,256,27], index: 0, kind: input, shape index: {}]   ;;  %s1386_s1 = inlined_call_operand.vmem [shape: bf16[27,128], index: 1, kind: input, shape index: {}]   ;;  %s1387_s2 = inlined_call_operand.vmem [shape: f32[1,128], index: 2, kind: input, shape index: {}]   ;;  %s1388_s3 = inlined_call_operand.vmem [shape: bf16[2,256,128], index: 3, kind: output, shape index: {}]  }
   0x1   :  { %s1254_s14 = smov 0  }
   0x2 LB: > { %s32_s15 = sadd.s32 1, %s1223_s13  ;;  %p901_p0 = scmp.ge.s32.totalorder %s1227_s14, 1  ;;  %s1227_s14 = sphi %s1254_s14, %s13_s14   ;;  %s1223_s13 = sphi %s1252_s13, %s1390_s13   ;;  %s1219_s12 = sphi %s1250_s12, %s1389_s12  }
   0x3   : > { %p34_p1 = scmp.ge.s32.totalorder %s32_s15, 2  ;;  %p184_p2 = scmp.lt.s32.totalorder %s1227_s14, 3 }
   0x5   : > { %s1392_s15 = smov (%p34_p1, %s32_s15), 0  ;;  %p185_p3 = pnand %p901_p0, %p184_p2 }
   0x6   : > { %v1187_v0 = vld [vmem:[%s1386_s1] sm:$0xff] (!%p185_p3)   ;;  %vm440_vm0 = vcmask (!%p185_p3), 1044480   ;;  %v1188_v1 = vld [vmem:[%s1386_s1 + $0x8] sm:$0x3f] (!%p185_p3)   ;;  %vm441_vm1 = vcmask (!%p185_p3), 1045504   ;;  %p227_p4 = scmp.lt.s32.totalorder (!%p185_p3), %s1219_s12, 1 }
   0x7   : > { %188 = sbr.rel (%p185_p3) target bundleno = 264 (0x108), region = 32  ;;  %1122 = vmatprep.subr.bf16.mxu0 (!%p185_p3), %v1187_v0  ;;  %1158 = vmatprep.subr.bf16.mxu1 (!%p185_p3), %v1187_v0  ;;  %v1229_v2 = vmov (!%p185_p3), 65535   ;;  %vm391_vm2 = vcmask (!%p185_p3), 220160   ;;  %v1319_v23 = vld [vmem:[%s1387_s2] ss:$0 sm:$0xff] (!%p185_p3) }
   0x8   : > { %1123 = vmatpush3.bf16.msra.mxu0 (!%p185_p3), %v1187_v0  ;;  %1160 = vmatpush3.bf16.msra.mxu1 (!%p185_p3), %v1187_v0  ;;  %v442_v3 = vsel (!%p185_p3), %vm440_vm0, 4294967295, %v1229_v2 }
   0x9   : > { %v443_v4 = vsel (!%p185_p3), %vm441_vm1, %v442_v3, 0 }
   0xa   : > { %v445_v5 = vand.u32 (!%p185_p3), %v1188_v1, %v443_v4 }
   0xc   : > { %1124 = vmatprep.subr.bf16.mxu0 (!%p185_p3), %v445_v5  ;;  %1159 = vmatprep.subr.bf16.mxu1 (!%p185_p3), %v445_v5 }
   0xd   : > { %1125 = vmatpush3.bf16.msra.mxu0 (!%p185_p3), %v445_v5  ;;  %1161 = vmatpush3.bf16.msra.mxu1 (!%p185_p3), %v445_v5 }
   0xe   : > { %s1394_s12 = smov (!%p227_p4, %s1219_s12), 1 }
   0xf   : > { %s975_s20 = sshll.u32 %s1394_s12, 7 }
  0x10   : > { %s1282_s23 = scalar_lea.vmem %s1385_s0, %s975_s20  ;;  %s1330_s28 = scalar_lea.vmem %s1388_s3, %s975_s20 }
  0x11   : > { %v1189_v6 = vld [vmem:[%s1282_s23] sm:$0xff]   ;;  %v1191_v8 = vld [vmem:[%s1282_s23 + $0x8] sm:$0xff]   ;;  %v1193_v10 = vld [vmem:[%s1282_s23 + $0x10] sm:$0xff]  }
  0x12   : > { %v1190_v7 = vld [vmem:[%s1282_s23 + $0x40] sm:$0xff]   ;;  %1126 = vmatprep.mubr.msk.bf16.mxu0 %vm391_vm2, %v1189_v6  ;;  %v1192_v9 = vld [vmem:[%s1282_s23 + $0x48] sm:$0xff]   ;;  %v1194_v11 = vld [vmem:[%s1282_s23 + $0x50] sm:$0xff]  }
  0x13   : > { %1142 = vmatprep.mubr.msk.bf16.mxu1 %vm391_vm2, %v1190_v7  ;;  %1127 = vmatmul.mubr.msk.bf16.vlgmr.msra.gmra.mrb[0].mxu0 %vm391_vm2, %v1191_v8  ;;  %v1195_v12 = vld [vmem:[%s1282_s23 + $0x18] sm:$0xff]   ;;  %v1197_v14 = vld [vmem:[%s1282_s23 + $0x20] sm:$0xff]   ;;  %v1199_v16 = vld [vmem:[%s1282_s23 + $0x28] sm:$0xff]  }
  0x14   : > { %1143 = vmatmul.mubr.msk.bf16.vlgmr.msra.gmra.mrb[0].mxu1 %vm391_vm2, %v1192_v9  ;;  %1130 = vmatprep.mubr.msk.bf16.mxu0 %vm391_vm2, %v1193_v10  ;;  %v1196_v13 = vld [vmem:[%s1282_s23 + $0x58] sm:$0xff]   ;;  %v1198_v15 = vld [vmem:[%s1282_s23 + $0x60] sm:$0xff]   ;;  %v1200_v17 = vld [vmem:[%s1282_s23 + $0x68] sm:$0xff]  }
  0x15   : > { %1146 = vmatprep.mubr.msk.bf16.mxu1 %vm391_vm2, %v1194_v11  ;;  %v1201_v18 = vld [vmem:[%s1282_s23 + $0x30] sm:$0xff]   ;;  %v1203_v20 = vld [vmem:[%s1282_s23 + $0x38] sm:$0xff]  }
  0x16   : > { %v1202_v19 = vld [vmem:[%s1282_s23 + $0x70] sm:$0xff]   ;;  %v1204_v21 = vld [vmem:[%s1282_s23 + $0x78] sm:$0xff]  }
  0x1b   : > { %1131 = vmatmul.mubr.msk.bf16.gmra.mrb[4].mxu0 %vm391_vm2, %v1195_v12 }
  0x1c   : > { %1147 = vmatmul.mubr.msk.bf16.gmra.mrb[4].mxu1 %vm391_vm2, %v1196_v13  ;;  %1134 = vmatprep.mubr.msk.bf16.mxu0 %vm391_vm2, %v1197_v14 }
  0x1d   : > { %1150 = vmatprep.mubr.msk.bf16.mxu1 %vm391_vm2, %v1198_v15 }
  0x23   : > { %1135 = vmatmul.mubr.msk.bf16.gmra.mrb[8].mxu0 %vm391_vm2, %v1199_v16 }
  0x24   : > { %1151 = vmatmul.mubr.msk.bf16.gmra.mrb[8].mxu1 %vm391_vm2, %v1200_v17  ;;  %1138 = vmatprep.mubr.msk.bf16.mxu0 %vm391_vm2, %v1201_v18 }
  0x25   : > { %1154 = vmatprep.mubr.msk.bf16.mxu1 %vm391_vm2, %v1202_v19 }
  0x2b   : > { %1139 = vmatmul.mubr.msk.bf16.gmra.mrb[12].mxu0 %vm391_vm2, %v1203_v20 }
  0x2c   : > { %1155 = vmatmul.mubr.msk.bf16.gmra.mrb[12].mxu1 %vm391_vm2, %v1204_v21 }
  0xe6   : > { %v1128_v22 = vpop.f32.mrb[0].mxu0 }
  0xe7   : > { %v1144_v24 = vpop.f32.mrb[0].mxu1  ;;  %v481_v25 = vpop.f32.mrb[1].mxu0  ;;  %v490_v28 = vadd.f32 %v1128_v22, %v1319_v23 }
  0xe8   : > { %v545_v26 = vpop.f32.mrb[1].mxu1  ;;  %v1129_v27 = vpop.f32.mrb[2].mxu0  ;;  %v554_v32 = vadd.f32 %v1144_v24, %v1319_v23  ;;  %v482_v33 = vadd.f32 %v1319_v23, %v481_v25 }
  0xe9   : > { %v493_v29 = vadd.f32 %v1129_v27, %v1319_v23  ;;  %v1145_v30 = vpop.f32.mrb[2].mxu1  ;;  %v484_v31 = vpop.f32.mrb[3].mxu0  ;;  %v546_v37 = vadd.f32 %v1319_v23, %v545_v26 }
  0xea   : > { %v557_v34 = vadd.f32 %v1145_v30, %v1319_v23  ;;  %v485_v35 = vadd.f32 %v1319_v23, %v484_v31  ;;  %v548_v36 = vpop.f32.mrb[3].mxu1 }
  0xeb   : > { %v1017_v38 = vpack.c.bf16 %v493_v29, %v490_v28  ;;  %v549_v39 = vadd.f32 %v1319_v23, %v548_v36 }
  0xec   : > { %v1057_v40 = vpack.c.bf16 %v557_v34, %v554_v32  ;;  %v1012_v41 = vpack.c.bf16 %v485_v35, %v482_v33 }
  0xed   : > { %1089 = vst [vmem:[%s1330_s28 + $0x8] sm:$0xff] %v1017_v38   ;;  %v1052_v42 = vpack.c.bf16 %v549_v39, %v546_v37 }
  0xee   : > { %1097 = vst [vmem:[%s1330_s28 + $0x48] sm:$0xff] %v1057_v40   ;;  %1013 = vst [vmem:[%s1330_s28] sm:$0xff] %v1012_v41   ;;  %v1132_v43 = vpop.f32.mrb[4].mxu0 }
  0xef   : > { %1096 = vst [vmem:[%s1330_s28 + $0x40] sm:$0xff] %v1052_v42   ;;  %v1148_v44 = vpop.f32.mrb[4].mxu1  ;;  %v497_v45 = vpop.f32.mrb[5].mxu0  ;;  %v506_v48 = vadd.f32 %v1132_v43, %v1319_v23 }
  0xf0   : > { %v561_v46 = vpop.f32.mrb[5].mxu1  ;;  %v1133_v47 = vpop.f32.mrb[6].mxu0  ;;  %v570_v52 = vadd.f32 %v1148_v44, %v1319_v23  ;;  %v498_v53 = vadd.f32 %v1319_v23, %v497_v45 }
  0xf1   : > { %v509_v49 = vadd.f32 %v1133_v47, %v1319_v23  ;;  %v1149_v50 = vpop.f32.mrb[6].mxu1  ;;  %v500_v51 = vpop.f32.mrb[7].mxu0  ;;  %v562_v57 = vadd.f32 %v1319_v23, %v561_v46 }
  0xf2   : > { %v573_v54 = vadd.f32 %v1149_v50, %v1319_v23  ;;  %v501_v55 = vadd.f32 %v1319_v23, %v500_v51  ;;  %v564_v56 = vpop.f32.mrb[7].mxu1 }
  0xf3   : > { %v1027_v58 = vpack.c.bf16 %v509_v49, %v506_v48  ;;  %v565_v59 = vadd.f32 %v1319_v23, %v564_v56 }
  0xf4   : > { %v1067_v60 = vpack.c.bf16 %v573_v54, %v570_v52  ;;  %v1022_v61 = vpack.c.bf16 %v501_v55, %v498_v53 }
  0xf5   : > { %1091 = vst [vmem:[%s1330_s28 + $0x18] sm:$0xff] %v1027_v58   ;;  %v1062_v62 = vpack.c.bf16 %v565_v59, %v562_v57 }
  0xf6   : > { %1099 = vst [vmem:[%s1330_s28 + $0x58] sm:$0xff] %v1067_v60   ;;  %1090 = vst [vmem:[%s1330_s28 + $0x10] sm:$0xff] %v1022_v61   ;;  %v1136_v63 = vpop.f32.mrb[8].mxu0 }
  0xf7   : > { %1098 = vst [vmem:[%s1330_s28 + $0x50] sm:$0xff] %v1062_v62   ;;  %v1152_v0 = vpop.f32.mrb[8].mxu1  ;;  %v513_v1 = vpop.f32.mrb[9].mxu0  ;;  %v522_v4 = vadd.f32 %v1136_v63, %v1319_v23 }
  0xf8   : > { %v577_v2 = vpop.f32.mrb[9].mxu1  ;;  %v1137_v3 = vpop.f32.mrb[10].mxu0  ;;  %v586_v8 = vadd.f32 %v1152_v0, %v1319_v23  ;;  %v514_v9 = vadd.f32 %v1319_v23, %v513_v1 }
  0xf9   : > { %v525_v5 = vadd.f32 %v1137_v3, %v1319_v23  ;;  %v1153_v6 = vpop.f32.mrb[10].mxu1  ;;  %v516_v7 = vpop.f32.mrb[11].mxu0  ;;  %v578_v13 = vadd.f32 %v1319_v23, %v577_v2 }
  0xfa   : > { %v589_v10 = vadd.f32 %v1153_v6, %v1319_v23  ;;  %v517_v11 = vadd.f32 %v1319_v23, %v516_v7  ;;  %v580_v12 = vpop.f32.mrb[11].mxu1 }
  0xfb   : > { %v1037_v14 = vpack.c.bf16 %v525_v5, %v522_v4  ;;  %v581_v15 = vadd.f32 %v1319_v23, %v580_v12 }
  0xfc   : > { %v1077_v16 = vpack.c.bf16 %v589_v10, %v586_v8  ;;  %v1032_v17 = vpack.c.bf16 %v517_v11, %v514_v9 }
  0xfd   : > { %1093 = vst [vmem:[%s1330_s28 + $0x28] sm:$0xff] %v1037_v14   ;;  %v1072_v18 = vpack.c.bf16 %v581_v15, %v578_v13 }
  0xfe   : > { %1101 = vst [vmem:[%s1330_s28 + $0x68] sm:$0xff] %v1077_v16   ;;  %1092 = vst [vmem:[%s1330_s28 + $0x20] sm:$0xff] %v1032_v17   ;;  %v1140_v19 = vpop.f32.mrb[12].mxu0 }
  0xff   : > { %1100 = vst [vmem:[%s1330_s28 + $0x60] sm:$0xff] %v1072_v18   ;;  %v1156_v20 = vpop.f32.mrb[12].mxu1  ;;  %v529_v21 = vpop.f32.mrb[13].mxu0  ;;  %v538_v25 = vadd.f32 %v1140_v19, %v1319_v23 }
 0x100   : > { %v593_v22 = vpop.f32.mrb[13].mxu1  ;;  %v1141_v24 = vpop.f32.mrb[14].mxu0  ;;  %v602_v29 = vadd.f32 %v1156_v20, %v1319_v23  ;;  %v530_v30 = vadd.f32 %v1319_v23, %v529_v21 }
 0x101   : > { %v541_v26 = vadd.f32 %v1141_v24, %v1319_v23  ;;  %v1157_v27 = vpop.f32.mrb[14].mxu1  ;;  %v532_v28 = vpop.f32.mrb[15].mxu0  ;;  %v594_v34 = vadd.f32 %v1319_v23, %v593_v22 }
 0x102   : > { %v605_v31 = vadd.f32 %v1157_v27, %v1319_v23  ;;  %v533_v32 = vadd.f32 %v1319_v23, %v532_v28  ;;  %v596_v33 = vpop.f32.mrb[15].mxu1 }
 0x103   : > { %v1047_v35 = vpack.c.bf16 %v541_v26, %v538_v25  ;;  %v597_v36 = vadd.f32 %v1319_v23, %v596_v33 }
 0x104   : > { %v1087_v37 = vpack.c.bf16 %v605_v31, %v602_v29  ;;  %v1042_v38 = vpack.c.bf16 %v533_v32, %v530_v30 }
 0x105   : > { %1095 = vst [vmem:[%s1330_s28 + $0x38] sm:$0xff] %v1047_v35   ;;  %v1082_v39 = vpack.c.bf16 %v597_v36, %v594_v34 }
 0x106   : > { %1103 = vst [vmem:[%s1330_s28 + $0x78] sm:$0xff] %v1087_v37   ;;  %1094 = vst [vmem:[%s1330_s28 + $0x30] sm:$0xff] %v1042_v38  }
 0x107   : > { %1102 = vst [vmem:[%s1330_s28 + $0x70] sm:$0xff] %v1082_v39  }
 0x108 PF: > { %s13_s14 = sadd.s32 1, %s1227_s14   ;;  %s1389_s12 = smov %s1223_s13 }
 0x109   : > { %p10_p5 = scmp.ge.s32.totalorder %s13_s14, 4   ;;  %s1390_s13 = smov %s1392_s15 }
 0x10b   :  { %12 = sbr.rel (!%p10_p5) target bundleno = 2 (0x2), region = 68 }

</bundles_post_ra>
